<compile_context>
chip_gen: v7x
topology: tpu7x:2x2x1
jax: 0.10.0
libtpu: 0.0.40
codegen_flags: <defaults>
</compile_context>

<pallas_src>
import numpy as np
import jax
import jax.numpy as jnp
from jax.experimental import pallas as pl
from jax.experimental.pallas import tpu as pltpu

LANE = 128
TILE_MAX = 32768  # lanes: (8, 32768) f32 tile = 1 MiB; double-buffered << VMEM limits


def _lane_tile(n):
    """Return (padded_extent, lane_tile) for n items mapped onto the lane axis."""
    n_pad = ((max(n, 1) + LANE - 1) // LANE) * LANE
    if n_pad <= TILE_MAX:
        return n_pad, n_pad          # single grid step over the whole extent
    tile = TILE_MAX
    n_pad = ((n_pad + tile - 1) // tile) * tile
    return n_pad, tile


# --------------------------------------------------------------------------
# Kernel A: per-tetrahedron classification -> tetindex only
#   input : sdf (4, F_pad) f32   (row j = SDF of vertex j of each tet)
#           thr (1,)       f32   scalar threshold in SMEM
#   output: tetindex (1, F_pad) i32 = sum_j (sdf_j > thr) * 2^j
# occupancy / validity / num_triangles are derived from tetindex on the host.
# --------------------------------------------------------------------------
def tet_classify_kernel(sdf_ref, thr_ref, tetidx_ref):
    thr = thr_ref[0]
    occ = (sdf_ref[...] > thr).astype(jnp.int32)           # (4, T)
    tetidx_ref[...] = (occ[0:1, :] + 2 * occ[1:2, :]
                       + 4 * occ[2:3, :] + 8 * occ[3:4, :])


def tet_classify(sdf4, threshold):
    """sdf4: (4, F) f32 device array. Returns tetindex (F,) int32 device array."""
    f = sdf4.shape[1]
    f_pad, tile = _lane_tile(f)
    sdf_p = jnp.pad(sdf4.astype(jnp.float32), ((0, 0), (0, f_pad - f)))
    thr = jnp.asarray([threshold], jnp.float32)

    tetidx = pl.pallas_call(
        tet_classify_kernel,
        out_shape=jax.ShapeDtypeStruct((1, f_pad), jnp.int32),
        grid=(f_pad // tile,),
        in_specs=[
            pl.BlockSpec((4, tile), lambda i: (0, i)),
            pl.BlockSpec(memory_space=pltpu.MemorySpace.SMEM),
        ],
        out_specs=pl.BlockSpec((1, tile), lambda i: (0, i)),
        compiler_params=pltpu.CompilerParams(dimension_semantics=("parallel",)),
    )(sdf_p, thr)
    return tetidx[0, :f]


# --------------------------------------------------------------------------
# Kernel B: edge zero-crossing interpolation (fused single input)
#   input : packed (8, E_pad) f32  rows = [p0x p0y p0z p1x p1y p1z s0 s1]
#   output: out    (3, E_pad) f32  = p0 * (-s1)/(s0-s1) + p1 * s0/(s0-s1)
# (matches torch: sdf[:, -1] *= -1; denom = sum; weights = flip(sdf)/denom)
# --------------------------------------------------------------------------
def edge_interp_kernel(in_ref, out_ref):
    x = in_ref[...]                      # (8, T)
    s0 = x[6:7, :]
    s1 = x[7:8, :]
    inv_denom = pl.reciprocal(s0 - s1, approx=True)   # EUP slot
    w0 = -s1 * inv_denom
    w1 = s0 * inv_denom
    out_ref[...] = x[0:3, :] * w0 + x[3:6, :] * w1


def edge_interp(verts_dev, sdf_dev, interp_v):
    """verts_dev: (N,3) f32 device, sdf_dev: (N,) f32 device, interp_v: (E,2) host int.
    Returns (E,3) f32 device array."""
    e = int(interp_v.shape[0])
    e_pad, tile = _lane_tile(e)
    pad = e_pad - e

    # Device-side gather: only the small (E,2) int32 index array crosses H2D.
    idx = jnp.asarray(interp_v.astype(np.int32)).reshape(-1)          # (2E,)
    pos_pairs = jnp.take(verts_dev, idx, axis=0).reshape(e, 6)        # (E,6)
    sdf_pairs = jnp.take(sdf_dev, idx, axis=0).reshape(e, 2)          # (E,2)

    # Fused (8, E_pad) input; pad sdf rows with (1, -1) so padded denom = 2.
    pos6 = jnp.pad(pos_pairs.T, ((0, 0), (0, pad)))
    s0 = jnp.pad(sdf_pairs[:, 0:1].T, ((0, 0), (0, pad)), constant_values=1.0)
    s1 = jnp.pad(sdf_pairs[:, 1:2].T, ((0, 0), (0, pad)), constant_values=-1.0)
    packed = jnp.concatenate([pos6, s0, s1], axis=0)                  # (8, E_pad)

    out = pl.pallas_call(
        edge_interp_kernel,
        out_shape=jax.ShapeDtypeStruct((3, e_pad), jnp.float32),
        grid=(e_pad // tile,),
        in_specs=[pl.BlockSpec((8, tile), lambda i: (0, i))],
        out_specs=pl.BlockSpec((3, tile), lambda i: (0, i)),
        compiler_params=pltpu.CompilerParams(dimension_semantics=("parallel",)),
    )(packed)
    return out[:, :e].T                                               # (E, 3)


# --------------------------------------------------------------------------
# Module port
# --------------------------------------------------------------------------
class BCCMarchingTetrahedraHelperPallas:
    def __init__(self, resolution, num_tets, key):
        self.resolution = resolution
        self.points_range = (0, 1)
        self.chunk_size = 16384
        self.base_tet_edges = np.array([0, 1, 0, 2, 0, 3, 1, 2, 1, 3, 2, 3], dtype=np.int64)
        self.triangle_table = np.array(
            [[-1, -1, -1, -1, -1, -1], [1, 0, 2, -1, -1, -1], [4, 0, 3, -1, -1, -1],
             [1, 4, 2, 1, 3, 4], [3, 1, 5, -1, -1, -1], [2, 3, 0, 2, 5, 3],
             [1, 4, 0, 1, 5, 4], [4, 2, 5, -1, -1, -1], [4, 5, 2, -1, -1, -1],
             [4, 1, 0, 4, 5, 1], [3, 2, 0, 3, 5, 2], [1, 3, 5, -1, -1, -1],
             [4, 1, 2, 4, 3, 1], [3, 0, 4, -1, -1, -1], [2, 0, 1, -1, -1, -1],
             [-1, -1, -1, -1, -1, -1]], dtype=np.int64)
        self.num_triangles_table = np.array(
            [0, 1, 1, 2, 1, 2, 2, 1, 1, 2, 2, 1, 2, 1, 1, 0], dtype=np.int64)

        # TODO(synk): `bcc_mesh` (BCC tet-grid generator used by grid_vertices) was not
        # provided; build a deterministic synthetic tet grid with the same index contract
        # (tet i uses vertices 4i..4i+3, edges[i,0,0] == 4i) and verts normalized to [0,1].
        self.num_tets = num_tets
        n_verts = 4 * num_tets
        v = jax.random.uniform(key, (n_verts, 3), jnp.float32)
        v = v / jnp.max(v)
        self.verts = v                                             # (N, 3) f32, on device
        edges = np.zeros((num_tets, 4, 3), dtype=np.int64)
        edges[:, 0, 0] = 4 * np.arange(num_tets, dtype=np.int64)
        self.edges = edges                                         # (F, 4, 3) i64

    def forward(self, sdf_n, threshold=0.0):
        f = self.num_tets

        # --- Pallas kernel A (device): per-tet index from SDF ---
        sdf_dev = jnp.asarray(sdf_n, jnp.float32)                  # (N,) stays on device
        sdf4 = sdf_dev.reshape(f, 4).T                             # (4, F) device layout
        tetindex = np.asarray(tet_classify(sdf4, threshold)).astype(np.int64)  # small D2H

        # Derived per-tet / per-vertex quantities (host, O(F)/O(N) bit-ops):
        num_triangles = self.num_triangles_table[tetindex]         # (F,)
        valid = num_triangles > 0                                  # 0 < popcount < 4
        occ_n = ((tetindex[:, None] >> np.arange(4)) & 1).astype(bool).reshape(-1)  # (N,)

        # --- dynamic-shape bookkeeping (host) ---
        # TODO(synk): boolean masking / torch.unique produce data-dependent shapes; no
        # clean Pallas equivalent, kept on host as in the original torch.no_grad block.
        base = self.edges[:, 0, 0][valid]                                    # (V,)
        all_verts4 = np.stack([base, base + 1, base + 2, base + 3], axis=1)  # (V, 4)
        all_edges = all_verts4[:, self.base_tet_edges].reshape(-1, 2)        # (V*6, 2)
        # sort_edges
        order = all_edges[:, 0] > all_edges[:, 1]
        a = np.where(order, all_edges[:, 1], all_edges[:, 0])
        b = np.where(order, all_edges[:, 0], all_edges[:, 1])
        all_edges = np.stack([a, b], axis=-1)                                # (V*6, 2)

        unique_edges, idx_map = np.unique(all_edges, axis=0, return_inverse=True)
        mask_edges = occ_n[unique_edges.reshape(-1)].reshape(-1, 2).sum(-1) == 1
        mapping = np.full(unique_edges.shape[0], -1, dtype=np.int64)
        mapping[mask_edges] = np.arange(int(mask_edges.sum()), dtype=np.int64)
        idx_map = mapping[idx_map]
        interp_v = unique_edges[mask_edges]                                  # (E, 2)

        # --- Pallas kernel B (device gathers + interpolation math) ---
        verts = edge_interp(self.verts, sdf_dev, interp_v)                   # (E, 3) device

        # --- face assembly (host gathers on data-dependent shapes) ---
        idx_map = idx_map.reshape(-1, 6)
        tet_v = tetindex[valid]
        ntri_v = num_triangles[valid]
        tt = self.triangle_table
        m1 = ntri_v == 1
        m2 = ntri_v == 2
        f1 = np.take_along_axis(idx_map[m1], tt[tet_v[m1]][:, :3], axis=1).reshape(-1, 3)
        f2 = np.take_along_axis(idx_map[m2], tt[tet_v[m2]][:, :6], axis=1).reshape(-1, 3)
        faces = np.concatenate([f1, f2], axis=0)

        # TODO(synk): trimesh.Trimesh / repair.fix_winding / mesh.invert have no
        # JAX/Pallas equivalent; returning the extracted verts/faces directly.
        return {
            "v_pos": verts.astype(jnp.float32),
            "t_pos_idx": jnp.asarray(faces.astype(np.int32)),  # torch.long -> int32 (x64 off)
        }


if __name__ == "__main__":
    key = jax.random.PRNGKey(0)
    k_verts, k_sdf = jax.random.split(key)

    num_tets = 64
    helper = BCCMarchingTetrahedraHelperPallas(resolution=8, num_tets=num_tets, key=k_verts)

    sdf_n = jax.random.normal(k_sdf, (4 * num_tets,), jnp.float32)   # per-vertex SDF
    out = helper.forward(sdf_n, threshold=0.0)

    jax.block_until_ready(out["v_pos"])
    jax.block_until_ready(out["t_pos_idx"])
    assert out["v_pos"].shape[1] == 3 and out["t_pos_idx"].shape[1] == 3
    print("KERNEL_OK")
</pallas_src>

<mosaic_0001>
module attributes {stable_mosaic.version = 11 : i64} {
  func.func @tet_classify_kernel(%arg0: i32, %arg1: memref<4x128xf32, #tpu.memory_space<vmem>>, %arg2: memref<1xf32, #tpu.memory_space<smem>>, %arg3: memref<1x128xi32, #tpu.memory_space<vmem>>) attributes {dimension_semantics = [#tpu.dimension_semantics<parallel>], iteration_bounds = array<i64: 1>, scalar_prefetch = 0 : i64, scratch_operands = 0 : i64, tpu.core_type = #tpu.core_type<tc>, window_params = [{transform_indices = @transform_0, window_bounds = array<i64: 4, 128>}, {transform_indices = @transform_1, window_bounds = array<i64: 1>}, {transform_indices = @transform_2, window_bounds = array<i64: 1, 128>}]} {
    %c0 = arith.constant 0 : index
    %0 = memref.load %arg2[%c0] : memref<1xf32, #tpu.memory_space<smem>>
    %c0_0 = arith.constant 0 : index
    %c0_1 = arith.constant 0 : index
    %1 = vector.load %arg1[%c0_0, %c0_1] : memref<4x128xf32, #tpu.memory_space<vmem>>, vector<4x128xf32>
    %2 = vector.broadcast %0 : f32 to vector<4x128xf32>
    %3 = arith.cmpf ogt, %1, %2 : vector<4x128xf32>
    %4 = arith.extui %3 : vector<4x128xi1> to vector<4x128xi32>
    %5 = vector.extract_strided_slice %4 {offsets = [0, 0], sizes = [1, 128], strides = [1, 1]} : vector<4x128xi32> to vector<1x128xi32>
    %6 = vector.extract_strided_slice %4 {offsets = [1, 0], sizes = [1, 128], strides = [1, 1]} : vector<4x128xi32> to vector<1x128xi32>
    %c2_i32 = arith.constant 2 : i32
    %7 = vector.broadcast %c2_i32 : i32 to vector<1x128xi32>
    %8 = arith.muli %7, %6 : vector<1x128xi32>
    %9 = arith.addi %5, %8 : vector<1x128xi32>
    %10 = vector.extract_strided_slice %4 {offsets = [2, 0], sizes = [1, 128], strides = [1, 1]} : vector<4x128xi32> to vector<1x128xi32>
    %c4_i32 = arith.constant 4 : i32
    %11 = vector.broadcast %c4_i32 : i32 to vector<1x128xi32>
    %12 = arith.muli %11, %10 : vector<1x128xi32>
    %13 = arith.addi %9, %12 : vector<1x128xi32>
    %14 = vector.extract_strided_slice %4 {offsets = [3, 0], sizes = [1, 128], strides = [1, 1]} : vector<4x128xi32> to vector<1x128xi32>
    %c8_i32 = arith.constant 8 : i32
    %15 = vector.broadcast %c8_i32 : i32 to vector<1x128xi32>
    %16 = arith.muli %15, %14 : vector<1x128xi32>
    %17 = arith.addi %13, %16 : vector<1x128xi32>
    %c0_2 = arith.constant 0 : index
    %c0_3 = arith.constant 0 : index
    %18 = vector.load %arg3[%c0_2, %c0_3] : memref<1x128xi32, #tpu.memory_space<vmem>>, vector<1x128xi32>
    tpu.vector_store %arg3[%c0_2, %c0_3], %17 {strides = array<i32>} : memref<1x128xi32, #tpu.memory_space<vmem>>, vector<1x128xi32>,
    return
  }
  func.func @transform_0(%arg0: i32) -> (i32, i32) {
    %c0_i32 = arith.constant 0 : i32
    %c0_i32_0 = arith.constant 0 : i32
    return %c0_i32, %arg0 : i32, i32
  }
  func.func @transform_1(%arg0: i32) -> i32 {
    %c0_i32 = arith.constant 0 : i32
    %c0_i32_0 = arith.constant 0 : i32
    return %c0_i32 : i32
  }
  func.func @transform_2(%arg0: i32) -> (i32, i32) {
    %c0_i32 = arith.constant 0 : i32
    %c0_i32_0 = arith.constant 0 : i32
    return %c0_i32, %arg0 : i32, i32
  }
}

</mosaic_0001>

<bundles_post_ra>
// kernel: tpu_custom_call.1
= control target key start
LH: loop header
LB: loop body
LE: loop exit
PB: predicated region body
PF: predicated region fallthrough
CT: control target
= control target key end

     0   :  { %8 = vsyncpa [#allocation4], 0  ;;  %s151_s0 = inlined_call_operand.hbm [shape: f32[4,128], index: 0, kind: input, shape index: {}]   ;;  %s152_s1 = inlined_call_operand.<no memory space> [shape: f32[1], index: 1, kind: input, shape index: {}]   ;;  %s153_s2 = inlined_call_operand.hbm [shape: s32[1,128], index: 2, kind: output, shape index: {}]  }
   0x1   :  { %9 = vsyncpa [#allocation5], 0  ;;  %s106_s9 = smov [#allocation3]   ;;  %s58_s13 = scalar_lea.hbm %s151_s0, 64 }
   0x2   :  { %s16_s10 = sshll.u32 %s106_s9, 4  ;;  %p59_p0 = scmp.ne.s32.totalorder %s151_s0, %s58_s13  ;;  %s17_s10 = int_to_ptr.vmem [resolvable:$true] %s16_s10 }
   0x3   :  { %p62_p1 = scmp.lt.u32.totalorder %s58_s13, %s151_s0 }
   0x5   :  { %p64_p2 = pnand %p62_p1, %p59_p0 }
   0x7   :  { %67 = shalt.err (!%p64_p2)
}
   0x8   :  { %s68_s18 = scalar_lea.vmem %s17_s10, 64  ;;  %p73_p4 = scmp.lt.s32.totalorder %s17_s10, %s17_s10 }
   0x9   :  { %p69_p3 = scmp.ne.s32.totalorder %s17_s10, %s68_s18  ;;  %p74_p5 = scmp.lt.s32.totalorder %s68_s18, %s68_s18 }
   0xb   :  { %p75_p6 = por %p74_p5, %p73_p4 }
   0xd   :  { %p76_p7 = pnand %p75_p6, %p69_p3 }
   0xf   :  { %79 = shalt.err (!%p76_p7)
}
  0x10   :  { %19 = dma.hbm_to_vmem [thread:$0]  %s151_s0, 64, %s17_s10, [#allocation4]  }
  0x11   :  { %102 = dma.done.wait [#allocation4], 64  }
  0x12   :  { %103 = vsyncadd [#allocation4], 4294967232  ;;  %v27_v0 = vstv %s152_s1  ;;  %v26_v1 = vld [vmem:[#allocation3] sm:$0xf]  ;;  %v107_v2 = vmov 0   ;;  %s108_s23 = smov [#allocation6]  }
  0x13   :  { %vm28_vm0 = vcmp.gt.f32.partialorder %v26_v1, %v27_v0  ;;  %s46_s24 = sshll.u32 %s108_s23, 4  ;;  %s47_s24 = int_to_ptr.vmem [resolvable:$true] %s46_s24 }
  0x14   :  { %v29_v3 = vsel %vm28_vm0, 1, %v107_v2  ;;  %s80_s0 = scalar_lea.vmem %s47_s24, 16  ;;  %s84_s1 = scalar_lea.vmem %s47_s24, 32 }
  0x15   :  { %v30_v4 = vmul.u32 2, %v29_v3  ;;  %v33_v5 = vmul.u32 4, %v29_v3  ;;  %p81_p8 = scmp.ne.s32.totalorder %s47_s24, %s80_s0  ;;  %p85_p9 = scmp.lt.s32.totalorder %s47_s24, %s47_s24 }
  0x16   :  { %v36_v6 = vmul.u32 8, %v29_v3  ;;  %p86_p10 = scmp.lt.s32.totalorder %s84_s1, %s80_s0 }
  0x17   :  { %v31_v7 = vrot.slane %v30_v4, 1  ;;  %v34_v8 = vrot.slane %v33_v5, 2 }
  0x18   :  { %v37_v10 = vrot.slane %v36_v6, 3  ;;  %p87_p11 = por %p86_p10, %p85_p9 }
  0x19   :  { %v32_v9 = vadd.s32 %v31_v7, %v29_v3 }
  0x1a   :  { %p88_p12 = pnand %p87_p11, %p81_p8 }
  0x1b   :  { %v35_v11 = vadd.s32 %v34_v8, %v32_v9 }
  0x1d   :  { %v38_v12 = vadd.s32 %v37_v10, %v35_v11 }
  0x1f   :  { %39 = vst [vmem:[#allocation6] sm:$0x1] %v38_v12 }
  0x20   :  { %91 = shalt.err (!%p88_p12)
}
  0x21   :  { %s92_s27 = scalar_lea.hbm %s153_s2, 16 }
  0x22   :  { %p93_p13 = scmp.ne.s32.totalorder %s153_s2, %s92_s27  ;;  %p96_p0 = scmp.lt.u32.totalorder %s92_s27, %s153_s2 }
  0x24   :  { %p98_p1 = pnand %p96_p0, %p93_p13 }
  0x26   :  { %101 = shalt.err (!%p98_p1)
}
  0x27   :  { %49 = dma.vmem_to_hbm [thread:$0]  %s47_s24, 16, %s153_s2, [#allocation5]  }
  0x28   :  { %104 = dma.done.wait [#allocation5], 16  }
  0x29   :  { %105 = vsyncadd [#allocation5], 4294967280 }
  0x2a   :  { %53 = vsyncpa [#allocation4], 1 }
  0x2b   :  { %54 = vsyncpa [#allocation5], 1 }

</bundles_post_ra>
